<compile_context>
chip_gen: v6e
topology: v6e:2x2x1
jax: 0.10.0
libtpu: 0.0.40
codegen_flags: <defaults>
</compile_context>

<pallas_src>
import jax
import jax.numpy as jnp
from jax import lax
from jax.experimental import pallas as pl
from jax.experimental.pallas import tpu as pltpu

EPS = 1e-3
_SCALES = (1, 2, 4, 6)      # full resolution + strides 2*i for i = 1..3


def _round_up(x, m):
    return (x + m - 1) // m * m


def _make_kernel(B, C, tP, valid_mask, max_depth):
    has_v = B > 2           # "vertical" gradient along dim 0 (batch), as in the torch code
    has_h = C > 2           # "horizontal" gradient along dim 1 (channel)

    def kernel(pred_ref, gt_ref, bits_ref, out_ref):
        pred = pred_ref[...].astype(jnp.float32)       # (B, C, tP)
        gt = gt_ref[...].astype(jnp.float32)
        bits = bits_ref[...]                           # (1, tP) int32 subsample bitmask

        # masked log-depth difference: one log + one divide instead of two logs
        d = jnp.log((pred + EPS) / (gt + EPS))
        if valid_mask:
            m = gt > 0.0
            if max_depth is not None:
                m = jnp.logical_and(m, gt <= max_depth)
            mask = m.astype(jnp.float32)
            d = d * mask
            pos_n = jnp.sum(mask, axis=(0, 1), keepdims=True)        # (1, 1, tP)

        # gradient magnitudes reduced over (batch, channel) -> per-pixel sums
        pos_g = jnp.zeros((1, 1, tP), jnp.float32)
        if has_v:
            v = jnp.abs(d[0:B - 2] - d[2:B])
            if valid_mask:
                v = v * (mask[0:B - 2] * mask[2:B])
            pos_g = pos_g + jnp.sum(v, axis=(0, 1), keepdims=True)
        if has_h:
            hg = jnp.abs(d[:, 0:C - 2] - d[:, 2:C])
            if valid_mask:
                hg = hg * (mask[:, 0:C - 2] * mask[:, 2:C])
            pos_g = pos_g + jnp.sum(hg, axis=(0, 1), keepdims=True)

        # per-scale masked reductions -> 8 scalars for this block
        sms = [((bits & (1 << k)) != 0).astype(jnp.float32) for k in range(len(_SCALES))]
        vals = [jnp.sum(pos_g * sm) for sm in sms]
        if valid_mask:
            vals += [jnp.sum(pos_n * sm) for sm in sms]
        else:
            # N is a compile-time constant (numel per scale), supplied by the wrapper.
            vals += [jnp.float32(0.0)] * len(_SCALES)

        # pack the 8 scalars into a lane-dense (8, 128) output tile (row j == vals[j])
        row = lax.broadcasted_iota(jnp.int32, (8, 128), 0)
        tile = jnp.zeros((8, 128), jnp.float32)
        for j, v in enumerate(vals):
            tile = jnp.where(row == j, v, tile)
        out_ref[...] = tile

    return kernel


def _subsample_bits(P, P_pad, W):
    """Per flattened-pixel int32 bitmask: bit k set iff the pixel belongs to scale
    _SCALES[k] (h % s == 0 and w % s == 0) and lies inside the un-padded H*W range."""
    pos = jnp.arange(P_pad, dtype=jnp.int32)
    h = pos // W
    w = pos % W
    inb = pos < P
    bits = inb.astype(jnp.int32)                       # bit 0: full resolution (+ in-bounds)
    for k, s in enumerate(_SCALES[1:], start=1):
        sm = inb & ((h % s) == 0) & ((w % s) == 0)
        bits = bits | (sm.astype(jnp.int32) << k)
    return bits.reshape(1, P_pad)


def gradient_loss(depth_pred, depth_gt, valid_mask=True, loss_weight=1.0, max_depth=None):
    """JAX/Pallas equivalent of GradientLoss.forward (all 4 scales fused in one kernel)."""
    B, C, H, W = depth_pred.shape
    P = H * W

    # lane-dense tiling of the flattened spatial axis; cap each VMEM buffer at ~1 MiB
    lane_cap = max(128, ((1 << 20) // (4 * B * C)) // 128 * 128)
    tP = min(lane_cap, 8192, _round_up(P, 128))
    P_pad = _round_up(P, tP)
    num_blocks = P_pad // tP

    pred = depth_pred.reshape(B, C, P)
    gt = depth_gt.reshape(B, C, P)
    if P_pad != P:
        pad = ((0, 0), (0, 0), (0, P_pad - P))
        pred = jnp.pad(pred, pad)                      # pad with 0 -> masked out in kernel
        gt = jnp.pad(gt, pad)
    bits = _subsample_bits(P, P_pad, W)

    kernel = _make_kernel(B, C, tP, valid_mask, max_depth)
    in_bytes = (pred.size + gt.size) * depth_pred.dtype.itemsize + bits.size * 4
    cost = pl.CostEstimate(
        flops=30 * B * C * P_pad,
        transcendentals=2 * B * C * P_pad,
        bytes_accessed=in_bytes + num_blocks * 8 * 128 * 4,
    )

    partial = pl.pallas_call(
        kernel,
        grid=(num_blocks,),
        in_specs=[
            pl.BlockSpec((B, C, tP), lambda i: (0, 0, i)),
            pl.BlockSpec((B, C, tP), lambda i: (0, 0, i)),
            pl.BlockSpec((1, tP), lambda i: (0, i)),
        ],
        out_specs=pl.BlockSpec((None, 8, 128), lambda i: (i, 0, 0)),
        out_shape=jax.ShapeDtypeStruct((num_blocks, 8, 128), jnp.float32),
        compiler_params=pltpu.CompilerParams(dimension_semantics=("parallel",)),
        cost_estimate=cost,
    )(pred, gt, bits)

    sums = jnp.sum(partial[:, :, 0], axis=0)           # (8,): [g_s per scale] + [n_s per scale]
    total = jnp.float32(0.0)
    for k, s in enumerate(_SCALES):
        g = sums[k]
        if valid_mask:
            n = sums[len(_SCALES) + k]
        else:
            n = jnp.float32(B * C * ((H + s - 1) // s) * ((W + s - 1) // s))
        total = total + g / n                          # like the original: no n == 0 guard
    return loss_weight * total


def gradient_loss_ref(depth_pred, depth_gt, valid_mask=True, loss_weight=1.0, max_depth=None):
    """Pure-JAX reference mirroring the PyTorch code line-for-line."""
    eps = 1e-3
    pairs = [(depth_pred, depth_gt)] + [
        (depth_pred[:, :, ::2 * i, ::2 * i], depth_gt[:, :, ::2 * i, ::2 * i])
        for i in range(1, 4)
    ]
    total = 0.0
    for x, t in pairs:
        if valid_mask:
            m = t > 0
            if max_depth is not None:
                m = jnp.logical_and(t > 0, t <= max_depth)
            m = m.astype(jnp.float32)
            n = jnp.sum(m)
        else:
            m = jnp.ones_like(t)
            n = x.size
        d = (jnp.log(x + eps) - jnp.log(t + eps)) * m
        v = jnp.abs(d[0:-2] - d[2:]) * (m[0:-2] * m[2:])
        h = jnp.abs(d[:, 0:-2] - d[:, 2:]) * (m[:, 0:-2] * m[:, 2:])
        total = total + (jnp.sum(h) + jnp.sum(v)) / n
    return loss_weight * total


def _run_case(key, shape, valid_mask, max_depth):
    k1, k2, k3 = jax.random.split(key, 3)
    pred = jax.random.uniform(k1, shape, jnp.float32, minval=0.1, maxval=10.0)
    gt_vals = jax.random.uniform(k2, shape, jnp.float32, minval=0.1, maxval=10.0)
    invalid = jax.random.uniform(k3, shape) < 0.2      # ~20% invalid pixels (gt == 0)
    gt = jnp.where(invalid, 0.0, gt_vals)

    loss = gradient_loss(pred, gt, valid_mask=valid_mask, loss_weight=1.0, max_depth=max_depth)
    loss = jax.block_until_ready(loss)
    ref = gradient_loss_ref(pred, gt, valid_mask=valid_mask, loss_weight=1.0, max_depth=max_depth)
    ref = jax.block_until_ready(ref)

    assert jnp.isfinite(loss), f"non-finite loss {loss} for {shape} vm={valid_mask} md={max_depth}"
    assert jnp.allclose(loss, ref, rtol=1e-4, atol=1e-5), (
        f"mismatch for {shape} vm={valid_mask} md={max_depth}: pallas={loss} ref={ref}")


if __name__ == "__main__":
    key = jax.random.PRNGKey(0)
    keys = jax.random.split(key, 4)
    # batch=4, channels=4 so both the dim-0 and dim-1 gradient slices are non-empty.
    _run_case(keys[0], (4, 4, 16, 16), True, None)
    _run_case(keys[1], (4, 4, 16, 16), True, 8.0)
    _run_case(keys[2], (4, 4, 16, 16), False, None)
    # non-128-multiple spatial size exercises the padded / in-bounds path (B=2 -> empty v-grad)
    _run_case(keys[3], (2, 4, 10, 12), True, None)
    print("KERNEL_OK")
</pallas_src>

<mosaic_0001>
module attributes {stable_mosaic.version = 11 : i64} {
  func.func @kernel(%arg0: i32, %arg1: memref<4x4x256xf32, #tpu.memory_space<vmem>>, %arg2: memref<4x4x256xf32, #tpu.memory_space<vmem>>, %arg3: memref<1x256xi32, #tpu.memory_space<vmem>>, %arg4: memref<1x8x128xf32, #tpu.memory_space<vmem>>) attributes {dimension_semantics = [#tpu.dimension_semantics<parallel>], iteration_bounds = array<i64: 1>, scalar_prefetch = 0 : i64, scratch_operands = 0 : i64, tpu.core_type = #tpu.core_type<tc>, window_params = [{transform_indices = @transform_0, window_bounds = array<i64: 4, 4, 256>}, {transform_indices = @transform_1, window_bounds = array<i64: 4, 4, 256>}, {transform_indices = @transform_2, window_bounds = array<i64: 1, 256>}, {transform_indices = @transform_3, window_bounds = array<i64: 1, 8, 128>}]} {
    %c0 = arith.constant 0 : index
    %c0_0 = arith.constant 0 : index
    %c0_1 = arith.constant 0 : index
    %0 = vector.load %arg1[%c0, %c0_0, %c0_1] : memref<4x4x256xf32, #tpu.memory_space<vmem>>, vector<4x4x256xf32>
    %c0_2 = arith.constant 0 : index
    %c0_3 = arith.constant 0 : index
    %c0_4 = arith.constant 0 : index
    %1 = vector.load %arg2[%c0_2, %c0_3, %c0_4] : memref<4x4x256xf32, #tpu.memory_space<vmem>>, vector<4x4x256xf32>
    %c0_5 = arith.constant 0 : index
    %c0_6 = arith.constant 0 : index
    %2 = vector.load %arg3[%c0_5, %c0_6] : memref<1x256xi32, #tpu.memory_space<vmem>>, vector<1x256xi32>
    %cst = arith.constant 1.000000e-03 : f32
    %3 = vector.broadcast %cst : f32 to vector<4x4x256xf32>
    %4 = arith.addf %0, %3 : vector<4x4x256xf32>
    %cst_7 = arith.constant 1.000000e-03 : f32
    %5 = vector.broadcast %cst_7 : f32 to vector<4x4x256xf32>
    %6 = arith.addf %1, %5 : vector<4x4x256xf32>
    %7 = arith.divf %4, %6 : vector<4x4x256xf32>
    %8 = math.log %7 : vector<4x4x256xf32>
    %cst_8 = arith.constant 0.000000e+00 : f32
    %9 = vector.broadcast %cst_8 : f32 to vector<4x4x256xf32>
    %10 = arith.cmpf ogt, %1, %9 : vector<4x4x256xf32>
    %11 = arith.extui %10 : vector<4x4x256xi1> to vector<4x4x256xi32>
    %12 = arith.sitofp %11 : vector<4x4x256xi32> to vector<4x4x256xf32>
    %13 = arith.mulf %8, %12 : vector<4x4x256xf32>
    %cst_9 = arith.constant dense<0.000000e+00> : vector<256xf32>
    %14 = vector.multi_reduction <add>, %12, %cst_9 [0, 1] : vector<4x4x256xf32> to vector<256xf32>
    %15 = vector.shape_cast %14 : vector<256xf32> to vector<1x1x256xf32>
    %cst_10 = arith.constant 0.000000e+00 : f32
    %16 = vector.broadcast %cst_10 : f32 to vector<1x1x256xf32>
    %17 = vector.extract_strided_slice %13 {offsets = [0, 0, 0], sizes = [2, 4, 256], strides = [1, 1, 1]} : vector<4x4x256xf32> to vector<2x4x256xf32>
    %18 = vector.extract_strided_slice %13 {offsets = [2, 0, 0], sizes = [2, 4, 256], strides = [1, 1, 1]} : vector<4x4x256xf32> to vector<2x4x256xf32>
    %19 = arith.subf %17, %18 : vector<2x4x256xf32>
    %20 = math.absf %19 : vector<2x4x256xf32>
    %21 = vector.extract_strided_slice %12 {offsets = [0, 0, 0], sizes = [2, 4, 256], strides = [1, 1, 1]} : vector<4x4x256xf32> to vector<2x4x256xf32>
    %22 = vector.extract_strided_slice %12 {offsets = [2, 0, 0], sizes = [2, 4, 256], strides = [1, 1, 1]} : vector<4x4x256xf32> to vector<2x4x256xf32>
    %23 = arith.mulf %21, %22 : vector<2x4x256xf32>
    %24 = arith.mulf %20, %23 : vector<2x4x256xf32>
    %cst_11 = arith.constant dense<0.000000e+00> : vector<256xf32>
    %25 = vector.multi_reduction <add>, %24, %cst_11 [0, 1] : vector<2x4x256xf32> to vector<256xf32>
    %26 = vector.shape_cast %25 : vector<256xf32> to vector<1x1x256xf32>
    %27 = arith.addf %16, %26 : vector<1x1x256xf32>
    %28 = vector.extract_strided_slice %13 {offsets = [0, 0, 0], sizes = [4, 2, 256], strides = [1, 1, 1]} : vector<4x4x256xf32> to vector<4x2x256xf32>
    %29 = vector.extract_strided_slice %13 {offsets = [0, 2, 0], sizes = [4, 2, 256], strides = [1, 1, 1]} : vector<4x4x256xf32> to vector<4x2x256xf32>
    %30 = arith.subf %28, %29 : vector<4x2x256xf32>
    %31 = math.absf %30 : vector<4x2x256xf32>
    %32 = vector.extract_strided_slice %12 {offsets = [0, 0, 0], sizes = [4, 2, 256], strides = [1, 1, 1]} : vector<4x4x256xf32> to vector<4x2x256xf32>
    %33 = vector.extract_strided_slice %12 {offsets = [0, 2, 0], sizes = [4, 2, 256], strides = [1, 1, 1]} : vector<4x4x256xf32> to vector<4x2x256xf32>
    %34 = arith.mulf %32, %33 : vector<4x2x256xf32>
    %35 = arith.mulf %31, %34 : vector<4x2x256xf32>
    %cst_12 = arith.constant dense<0.000000e+00> : vector<256xf32>
    %36 = vector.multi_reduction <add>, %35, %cst_12 [0, 1] : vector<4x2x256xf32> to vector<256xf32>
    %37 = vector.shape_cast %36 : vector<256xf32> to vector<1x1x256xf32>
    %38 = arith.addf %27, %37 : vector<1x1x256xf32>
    %c1_i32 = arith.constant 1 : i32
    %39 = vector.broadcast %c1_i32 : i32 to vector<1x256xi32>
    %40 = arith.andi %2, %39 : vector<1x256xi32>
    %c0_i32 = arith.constant 0 : i32
    %41 = vector.broadcast %c0_i32 : i32 to vector<1x256xi32>
    %42 = arith.cmpi ne, %40, %41 : vector<1x256xi32>
    %43 = arith.extui %42 : vector<1x256xi1> to vector<1x256xi32>
    %44 = arith.sitofp %43 : vector<1x256xi32> to vector<1x256xf32>
    %c2_i32 = arith.constant 2 : i32
    %45 = vector.broadcast %c2_i32 : i32 to vector<1x256xi32>
    %46 = arith.andi %2, %45 : vector<1x256xi32>
    %c0_i32_13 = arith.constant 0 : i32
    %47 = vector.broadcast %c0_i32_13 : i32 to vector<1x256xi32>
    %48 = arith.cmpi ne, %46, %47 : vector<1x256xi32>
    %49 = arith.extui %48 : vector<1x256xi1> to vector<1x256xi32>
    %50 = arith.sitofp %49 : vector<1x256xi32> to vector<1x256xf32>
    %c4_i32 = arith.constant 4 : i32
    %51 = vector.broadcast %c4_i32 : i32 to vector<1x256xi32>
    %52 = arith.andi %2, %51 : vector<1x256xi32>
    %c0_i32_14 = arith.constant 0 : i32
    %53 = vector.broadcast %c0_i32_14 : i32 to vector<1x256xi32>
    %54 = arith.cmpi ne, %52, %53 : vector<1x256xi32>
    %55 = arith.extui %54 : vector<1x256xi1> to vector<1x256xi32>
    %56 = arith.sitofp %55 : vector<1x256xi32> to vector<1x256xf32>
    %c8_i32 = arith.constant 8 : i32
    %57 = vector.broadcast %c8_i32 : i32 to vector<1x256xi32>
    %58 = arith.andi %2, %57 : vector<1x256xi32>
    %c0_i32_15 = arith.constant 0 : i32
    %59 = vector.broadcast %c0_i32_15 : i32 to vector<1x256xi32>
    %60 = arith.cmpi ne, %58, %59 : vector<1x256xi32>
    %61 = arith.extui %60 : vector<1x256xi1> to vector<1x256xi32>
    %62 = arith.sitofp %61 : vector<1x256xi32> to vector<1x256xf32>
    %63 = vector.shape_cast %44 : vector<1x256xf32> to vector<1x1x256xf32>
    %64 = arith.mulf %38, %63 : vector<1x1x256xf32>
    %65 = vector.shape_cast %64 : vector<1x1x256xf32> to vector<1x1x1x256xf32>
    %cst_16 = arith.constant dense<0.000000e+00> : vector<1xf32>
    %66 = vector.multi_reduction <add>, %65, %cst_16 [1, 2, 3] : vector<1x1x1x256xf32> to vector<1xf32>
    %67 = vector.shape_cast %66 : vector<1xf32> to vector<1x1x1x1xf32>
    %68 = vector.extract %67[0, 0, 0, 0] : f32 from vector<1x1x1x1xf32>
    %69 = vector.shape_cast %50 : vector<1x256xf32> to vector<1x1x256xf32>
    %70 = arith.mulf %38, %69 : vector<1x1x256xf32>
    %71 = vector.shape_cast %70 : vector<1x1x256xf32> to vector<1x1x1x256xf32>
    %cst_17 = arith.constant dense<0.000000e+00> : vector<1xf32>
    %72 = vector.multi_reduction <add>, %71, %cst_17 [1, 2, 3] : vector<1x1x1x256xf32> to vector<1xf32>
    %73 = vector.shape_cast %72 : vector<1xf32> to vector<1x1x1x1xf32>
    %74 = vector.extract %73[0, 0, 0, 0] : f32 from vector<1x1x1x1xf32>
    %75 = vector.shape_cast %56 : vector<1x256xf32> to vector<1x1x256xf32>
    %76 = arith.mulf %38, %75 : vector<1x1x256xf32>
    %77 = vector.shape_cast %76 : vector<1x1x256xf32> to vector<1x1x1x256xf32>
    %cst_18 = arith.constant dense<0.000000e+00> : vector<1xf32>
    %78 = vector.multi_reduction <add>, %77, %cst_18 [1, 2, 3] : vector<1x1x1x256xf32> to vector<1xf32>
    %79 = vector.shape_cast %78 : vector<1xf32> to vector<1x1x1x1xf32>
    %80 = vector.extract %79[0, 0, 0, 0] : f32 from vector<1x1x1x1xf32>
    %81 = vector.shape_cast %62 : vector<1x256xf32> to vector<1x1x256xf32>
    %82 = arith.mulf %38, %81 : vector<1x1x256xf32>
    %83 = vector.shape_cast %82 : vector<1x1x256xf32> to vector<1x1x1x256xf32>
    %cst_19 = arith.constant dense<0.000000e+00> : vector<1xf32>
    %84 = vector.multi_reduction <add>, %83, %cst_19 [1, 2, 3] : vector<1x1x1x256xf32> to vector<1xf32>
    %85 = vector.shape_cast %84 : vector<1xf32> to vector<1x1x1x1xf32>
    %86 = vector.extract %85[0, 0, 0, 0] : f32 from vector<1x1x1x1xf32>
    %87 = vector.shape_cast %44 : vector<1x256xf32> to vector<1x1x256xf32>
    %88 = arith.mulf %15, %87 : vector<1x1x256xf32>
    %89 = vector.shape_cast %88 : vector<1x1x256xf32> to vector<1x1x1x256xf32>
    %cst_20 = arith.constant dense<0.000000e+00> : vector<1xf32>
    %90 = vector.multi_reduction <add>, %89, %cst_20 [1, 2, 3] : vector<1x1x1x256xf32> to vector<1xf32>
    %91 = vector.shape_cast %90 : vector<1xf32> to vector<1x1x1x1xf32>
    %92 = vector.extract %91[0, 0, 0, 0] : f32 from vector<1x1x1x1xf32>
    %93 = vector.shape_cast %50 : vector<1x256xf32> to vector<1x1x256xf32>
    %94 = arith.mulf %15, %93 : vector<1x1x256xf32>
    %95 = vector.shape_cast %94 : vector<1x1x256xf32> to vector<1x1x1x256xf32>
    %cst_21 = arith.constant dense<0.000000e+00> : vector<1xf32>
    %96 = vector.multi_reduction <add>, %95, %cst_21 [1, 2, 3] : vector<1x1x1x256xf32> to vector<1xf32>
    %97 = vector.shape_cast %96 : vector<1xf32> to vector<1x1x1x1xf32>
    %98 = vector.extract %97[0, 0, 0, 0] : f32 from vector<1x1x1x1xf32>
    %99 = vector.shape_cast %56 : vector<1x256xf32> to vector<1x1x256xf32>
    %100 = arith.mulf %15, %99 : vector<1x1x256xf32>
    %101 = vector.shape_cast %100 : vector<1x1x256xf32> to vector<1x1x1x256xf32>
    %cst_22 = arith.constant dense<0.000000e+00> : vector<1xf32>
    %102 = vector.multi_reduction <add>, %101, %cst_22 [1, 2, 3] : vector<1x1x1x256xf32> to vector<1xf32>
    %103 = vector.shape_cast %102 : vector<1xf32> to vector<1x1x1x1xf32>
    %104 = vector.extract %103[0, 0, 0, 0] : f32 from vector<1x1x1x1xf32>
    %105 = vector.shape_cast %62 : vector<1x256xf32> to vector<1x1x256xf32>
    %106 = arith.mulf %15, %105 : vector<1x1x256xf32>
    %107 = vector.shape_cast %106 : vector<1x1x256xf32> to vector<1x1x1x256xf32>
    %cst_23 = arith.constant dense<0.000000e+00> : vector<1xf32>
    %108 = vector.multi_reduction <add>, %107, %cst_23 [1, 2, 3] : vector<1x1x1x256xf32> to vector<1xf32>
    %109 = vector.shape_cast %108 : vector<1xf32> to vector<1x1x1x1xf32>
    %110 = vector.extract %109[0, 0, 0, 0] : f32 from vector<1x1x1x1xf32>
    %111 = tpu.iota {dimensions = array<i32: 0>} : vector<8x128xi32>
    %cst_24 = arith.constant 0.000000e+00 : f32
    %112 = vector.broadcast %cst_24 : f32 to vector<8x128xf32>
    %c0_i32_25 = arith.constant 0 : i32
    %113 = vector.broadcast %c0_i32_25 : i32 to vector<8x128xi32>
    %114 = arith.cmpi eq, %111, %113 : vector<8x128xi32>
    %115 = vector.broadcast %68 : f32 to vector<8x128xf32>
    %116 = arith.select %114, %115, %112 : vector<8x128xi1>, vector<8x128xf32>
    %c1_i32_26 = arith.constant 1 : i32
    %117 = vector.broadcast %c1_i32_26 : i32 to vector<8x128xi32>
    %118 = arith.cmpi eq, %111, %117 : vector<8x128xi32>
    %119 = vector.broadcast %74 : f32 to vector<8x128xf32>
    %120 = arith.select %118, %119, %116 : vector<8x128xi1>, vector<8x128xf32>
    %c2_i32_27 = arith.constant 2 : i32
    %121 = vector.broadcast %c2_i32_27 : i32 to vector<8x128xi32>
    %122 = arith.cmpi eq, %111, %121 : vector<8x128xi32>
    %123 = vector.broadcast %80 : f32 to vector<8x128xf32>
    %124 = arith.select %122, %123, %120 : vector<8x128xi1>, vector<8x128xf32>
    %c3_i32 = arith.constant 3 : i32
    %125 = vector.broadcast %c3_i32 : i32 to vector<8x128xi32>
    %126 = arith.cmpi eq, %111, %125 : vector<8x128xi32>
    %127 = vector.broadcast %86 : f32 to vector<8x128xf32>
    %128 = arith.select %126, %127, %124 : vector<8x128xi1>, vector<8x128xf32>
    %c4_i32_28 = arith.constant 4 : i32
    %129 = vector.broadcast %c4_i32_28 : i32 to vector<8x128xi32>
    %130 = arith.cmpi eq, %111, %129 : vector<8x128xi32>
    %131 = vector.broadcast %92 : f32 to vector<8x128xf32>
    %132 = arith.select %130, %131, %128 : vector<8x128xi1>, vector<8x128xf32>
    %c5_i32 = arith.constant 5 : i32
    %133 = vector.broadcast %c5_i32 : i32 to vector<8x128xi32>
    %134 = arith.cmpi eq, %111, %133 : vector<8x128xi32>
    %135 = vector.broadcast %98 : f32 to vector<8x128xf32>
    %136 = arith.select %134, %135, %132 : vector<8x128xi1>, vector<8x128xf32>
    %c6_i32 = arith.constant 6 : i32
    %137 = vector.broadcast %c6_i32 : i32 to vector<8x128xi32>
    %138 = arith.cmpi eq, %111, %137 : vector<8x128xi32>
    %139 = vector.broadcast %104 : f32 to vector<8x128xf32>
    %140 = arith.select %138, %139, %136 : vector<8x128xi1>, vector<8x128xf32>
    %c7_i32 = arith.constant 7 : i32
    %141 = vector.broadcast %c7_i32 : i32 to vector<8x128xi32>
    %142 = arith.cmpi eq, %111, %141 : vector<8x128xi32>
    %143 = vector.broadcast %110 : f32 to vector<8x128xf32>
    %144 = arith.select %142, %143, %140 : vector<8x128xi1>, vector<8x128xf32>
    %c0_29 = arith.constant 0 : index
    %c0_30 = arith.constant 0 : index
    %c0_31 = arith.constant 0 : index
    %145 = vector.load %arg4[%c0_29, %c0_30, %c0_31] : memref<1x8x128xf32, #tpu.memory_space<vmem>>, vector<1x8x128xf32>
    %146 = vector.shape_cast %145 : vector<1x8x128xf32> to vector<8x128xf32>
    %147 = vector.shape_cast %144 : vector<8x128xf32> to vector<1x8x128xf32>
    tpu.vector_store %arg4[%c0_29, %c0_30, %c0_31], %147 {strides = array<i32>} : memref<1x8x128xf32, #tpu.memory_space<vmem>>, vector<1x8x128xf32>,
    return
  }
  func.func @transform_0(%arg0: i32) -> (i32, i32, i32) {
    %c0_i32 = arith.constant 0 : i32
    %c0_i32_0 = arith.constant 0 : i32
    %c0_i32_1 = arith.constant 0 : i32
    return %c0_i32, %c0_i32_0, %arg0 : i32, i32, i32
  }
  func.func @transform_1(%arg0: i32) -> (i32, i32, i32) {
    %c0_i32 = arith.constant 0 : i32
    %c0_i32_0 = arith.constant 0 : i32
    %c0_i32_1 = arith.constant 0 : i32
    return %c0_i32, %c0_i32_0, %arg0 : i32, i32, i32
  }
  func.func @transform_2(%arg0: i32) -> (i32, i32) {
    %c0_i32 = arith.constant 0 : i32
    %c0_i32_0 = arith.constant 0 : i32
    return %c0_i32, %arg0 : i32, i32
  }
  func.func @transform_3(%arg0: i32) -> (i32, i32, i32) {
    %c0_i32 = arith.constant 0 : i32
    %c0_i32_0 = arith.constant 0 : i32
    %c0_i32_1 = arith.constant 0 : i32
    return %arg0, %c0_i32, %c0_i32_0 : i32, i32, i32
  }
}

</mosaic_0001>

<bundles_post_ra>
// kernel: tpu_custom_call.1
= control target key start
LH: loop header
LB: loop body
LE: loop exit
PB: predicated region body
PF: predicated region fallthrough
CT: control target
= control target key end

     0   :  { %8 = vsyncpa [#allocation3], 0  ;;  %s754_s0 = inlined_call_operand.hbm [shape: f32[4,4,256], index: 0, kind: input, shape index: {}]   ;;  %s755_s1 = inlined_call_operand.hbm [shape: f32[4,4,256], index: 1, kind: input, shape index: {}]   ;;  %s756_s2 = inlined_call_operand.vmem [shape: s32[1,256], index: 2, kind: input, shape index: {}]   ;;  %s757_s3 = inlined_call_operand.hbm [shape: f32[1,8,128], index: 3, kind: output, shape index: {}]  }
   0x1   :  { %9 = vsyncpa [#allocation6], 0 }
   0x2   :  { %10 = vsyncpa [#allocation4], 0  ;;  %s586_s12 = smov [#allocation2]  }
   0x3   :  { %s16_s13 = sshll.u32 %s586_s12, 4  ;;  %s17_s13 = int_to_ptr.vmem [resolvable:$true] %s16_s13 }
   0x4   :  { %s528_s14 = scalar_lea.vmem %s17_s13, 512  ;;  %p533_p1 = scmp.lt.s32.totalorder %s17_s13, %s17_s13 }
   0x5   :  { %p529_p0 = scmp.ne.s32.totalorder %s17_s13, %s528_s14  ;;  %p534_p2 = scmp.lt.s32.totalorder %s528_s14, %s528_s14 }
   0x7   :  { %p535_p3 = por %p534_p2, %p533_p1 }
   0x9   :  { %p536_p4 = pnand %p535_p3, %p529_p0 }
   0xb   :  { %539 = shalt.err (!%p536_p4)
}
   0xc   :  { %s587_s15 = smov 128   ;;  %s588_s16 = smov 8  }
   0xd   :  { %22 = dma.hbm_to_vmem [thread:$0]  %s754_s0, 512, %s17_s13, [#allocation3], %s587_s15, %s587_s15, %s588_s16  }
   0xe   :  { %s589_s19 = smov [#allocation5]  }
   0xf   :  { %s28_s20 = sshll.u32 %s589_s19, 4  ;;  %s29_s20 = int_to_ptr.vmem [resolvable:$true] %s28_s20 }
  0x10   :  { %s548_s21 = scalar_lea.vmem %s29_s20, 512  ;;  %p553_p6 = scmp.lt.s32.totalorder %s29_s20, %s29_s20 }
  0x11   :  { %p549_p5 = scmp.ne.s32.totalorder %s29_s20, %s548_s21  ;;  %p554_p7 = scmp.lt.s32.totalorder %s548_s21, %s548_s21 }
  0x13   :  { %p555_p8 = por %p554_p7, %p553_p6 }
  0x15   :  { %p556_p9 = pnand %p555_p8, %p549_p5 }
  0x17   :  { %559 = shalt.err (!%p556_p9)
}
  0x18   :  { %34 = dma.hbm_to_vmem [thread:$0]  %s755_s1, 512, %s29_s20, [#allocation6], %s587_s15, %s587_s15, %s588_s16  }
  0x19   :  { %580 = dma.done.wait [#allocation3], 512  }
  0x1a   :  { %581 = vsyncadd [#allocation3], 4294966784 }
  0x1b   :  { %582 = dma.done.wait [#allocation6], 512  }
  0x1c   :  { %583 = vsyncadd [#allocation6], 4294966784  ;;  %v47_v0 = vld [vmem:[#allocation5] sm:$0xff]  ;;  %v48_v1 = vld [vmem:[#allocation5 + $0x8] sm:$0xff]  ;;  %vm104_vm1 = vcmask 1043456   ;;  %v590_v7 = vmov 0.0   ;;  %v267_v29 = vlaneseq }
  0x1d   :  { %v49_v2 = vld [vmem:[#allocation5 + $0x10] sm:$0xff]  ;;  %v50_v3 = vld [vmem:[#allocation5 + $0x18] sm:$0xff]  ;;  %v57_v4 = vadd.f32 0.001, %v48_v1  ;;  %vm76_vm0 = vcmp.gt.f32.partialorder %v47_v0, 0.0  ;;  %vm77_vm2 = vcmp.gt.f32.partialorder %v48_v1, 0.0 }
  0x1e   :  { %v58_v5 = vadd.f32 0.001, %v49_v2  ;;  %v59_v6 = vadd.f32 0.001, %v50_v3  ;;  %vm78_vm3 = vcmp.gt.f32.partialorder %v49_v2, 0.0  ;;  %vm79_vm4 = vcmp.gt.f32.partialorder %v50_v3, 0.0 }
  0x1f   :  { %504 = vrcp.f32 %v57_v4  ;;  %v619_v8 = vsel %vm76_vm0, 1.0, %v590_v7  ;;  %v622_v9 = vsel %vm77_vm2, 1.0, %v590_v7  ;;  %v625_v10 = vsel %vm78_vm3, 1.0, %v590_v7  ;;  %v650_v23 = vld [vmem:[%s756_s2] sm:$0x3]  ;;  %v44_v31 = vld [vmem:[#allocation2 + $0x8] sm:$0xff] }
  0x20   :  { %506 = vrcp.f32 %v58_v5  ;;  %v628_v11 = vsel %vm79_vm4, 1.0, %v590_v7  ;;  %v96_v12 = vcombine.high %v619_v8, %v619_v8  ;;  %v97_v13 = vcombine.high %v622_v9, %v622_v9  ;;  %v45_v34 = vld [vmem:[#allocation2 + $0x10] sm:$0xff]  ;;  %v46_v36 = vld [vmem:[#allocation2 + $0x18] sm:$0xff]  ;;  %v43_v49 = vld [vmem:[#allocation2] sm:$0xff]  ;;  %s591_s29 = smov [#allocation7]  }
  0x21   :  { %508 = vrcp.f32 %v59_v6  ;;  %v98_v14 = vcombine.high %v625_v10, %v625_v10  ;;  %v99_v15 = vcombine.high %v628_v11, %v628_v11  ;;  %v105_v16 = vsel %vm104_vm1, %v619_v8, 0.0  ;;  %s456_s30 = sshll.u32 %s591_s29, 4  ;;  %s457_s30 = int_to_ptr.vmem [resolvable:$true] %s456_s30 }
  0x22   :  { %v106_v17 = vsel %vm104_vm1, %v622_v9, 0.0  ;;  %v108_v18 = vsel %vm104_vm1, %v625_v10, 0.0  ;;  %v118_v20 = vsel %vm104_vm1, %v96_v12, 0.0  ;;  %v119_v21 = vsel %vm104_vm1, %v97_v13, 0.0  ;;  %s560_s6 = scalar_lea.vmem %s457_s30, 128  ;;  %p565_p11 = scmp.lt.s32.totalorder %s457_s30, %s457_s30 }
  0x23   :  { %v107_v19 = vadd.f32 %v106_v17, %v105_v16  ;;  %v121_v22 = vsel %vm104_vm1, %v98_v14, 0.0  ;;  %v110_v24 = vsel %vm104_vm1, %v628_v11, 0.0  ;;  %v120_v25 = vadd.f32 %v119_v21, %v118_v20  ;;  %p561_p10 = scmp.ne.s32.totalorder %s457_s30, %s560_s6  ;;  %p566_p12 = scmp.lt.s32.totalorder %s560_s6, %s560_s6 }
  0x24   :  { %v56_v26 = vadd.f32 0.001, %v47_v0  ;;  %v123_v28 = vsel %vm104_vm1, %v99_v15, 0.0  ;;  %v254_v33 = vand.u32 2, %v650_v23  ;;  %v656_v38 = vshrl.u32 %v267_v29, 7 }
  0x25   :  { %v109_v27 = vadd.f32 %v108_v18, %v107_v19  ;;  %v122_v30 = vadd.f32 %v121_v22, %v120_v25  ;;  %v53_v39 = vadd.f32 0.001, %v44_v31  ;;  %v54_v41 = vadd.f32 0.001, %v45_v34  ;;  %p567_p13 = por %p566_p12, %p565_p11 }
  0x26   :  { %510 = vrcp.f32 %v56_v26  ;;  %vm255_vm5 = vcmp.ne.s32.totalorder %v254_v33, 0  ;;  %v55_v43 = vadd.f32 0.001, %v46_v36  ;;  %v659_v48 = vsub.s32 0, %v656_v38 }
  0x27   :  { %v111_v32 = vadd.f32 %v110_v24, %v109_v27  ;;  %v124_v35 = vadd.f32 %v123_v28, %v122_v30  ;;  %v479_v53 = vsel %vm255_vm5, 1.0, %v590_v7  ;;  %v663_v54 = vsub.s32 1, %v656_v38  ;;  %p568_p0 = pnand %p567_p13, %p561_p10 }
  0x28   :  { %v52_v59 = vadd.f32 0.001, %v43_v49  ;;  %v666_v61 = vrot.slane %v479_v53, %v659_v48  ;;  %vm279_vm6 = vcmask 1040384   ;;  %v475_v22 = vrot.slane %v622_v9, 10 }
  0x29   :  { %v112_v37 = vrot.slane %v111_v32, 4  ;;  %v125_v40 = vrot.slane %v124_v35, 4  ;;  %v669_v63 = vrot.slane %v479_v53, %v663_v54  ;;  %v476_v26 = vrot.slane %v625_v10, 10 }
  0x2a   :  { %v136_v27 = vmul.f32 %v628_v11, %v622_v9  ;;  %v477_v33 = vrot.slane %v628_v11, 10  ;;  %v202_v36 = vmul.f32 %v475_v22, %v622_v9  ;;  %vm221_vm7 = vcmask 1041408  }
  0x2b   :  { %v113_v42 = vadd.f32 %v112_v37, %v111_v32  ;;  %v126_v45 = vadd.f32 %v125_v40, %v124_v35  ;;  %vm425_vm11 = vcmp.eq.s32.totalorder %v656_v38, 0  ;;  %vm428_vm12 = vcmp.eq.s32.totalorder %v656_v38, 1 }
  0x2c   :  { %v505_v44 = vpop.eup %504  ;;  %vm431_vm13 = vcmp.eq.s32.totalorder %v656_v38, 2  ;;  %vm434_vm14 = vcmp.eq.s32.totalorder %v656_v38, 3  ;;  %vm437_vm15 = vcmp.eq.s32.totalorder %v656_v38, 4  ;;  %vm440_vm0 = vcmp.eq.s32.totalorder %v656_v38, 5 }
  0x2d   :  { %v507_v46 = vpop.eup %506  ;;  %v114_v47 = vrot.slane %v113_v42, 2  ;;  %v63_v50 = vmul.f32 %v505_v44, %v53_v39  ;;  %v127_v52 = vrot.slane %v126_v45, 2  ;;  %v474_v44 = vrot.slane %v619_v8, 10 }
  0x2e   :  { %v509_v51 = vpop.eup %508  ;;  %v65_v55 = vmul.f32 %v507_v46, %v54_v41  ;;  %v203_v41 = vmul.f32 %v476_v26, %v625_v10  ;;  %vm446_vm2 = vcmp.eq.s32.totalorder %v656_v38, 7 }
  0x2f   :  { %v115_v56 = vadd.f32 %v114_v47, %v113_v42  ;;  %v67_v57 = vmul.f32 %v509_v51, %v55_v43  ;;  %512 = vlog2.f32 %v63_v50  ;;  %v128_v58 = vadd.f32 %v127_v52, %v126_v45 }
  0x30   :  { %514 = vlog2.f32 %v65_v55  ;;  %v204_v47 = vmul.f32 %v477_v33, %v628_v11  ;;  %v135_v50 = vmul.f32 %v625_v10, %v619_v8 }
  0x31   :  { %v116_v60 = vrot.slane %v115_v56, 1  ;;  %516 = vlog2.f32 %v67_v57  ;;  %v129_v62 = vrot.slane %v128_v58, 1  ;;  %v201_v57 = vmul.f32 %v474_v44, %v619_v8 }
  0x33   :  { %v511_v0 = vpop.eup %510  ;;  %v671_v1 = vadd.f32 %v116_v60, %v115_v56  ;;  %v673_v2 = vadd.f32 %v129_v62, %v128_v58 }
  0x34   :  { %v61_v3 = vmul.f32 %v511_v0, %v52_v59 }
  0x35   :  { %v381_v4 = vmul.f32 %v666_v61, %v671_v1  ;;  %v382_v5 = vmul.f32 %v669_v63, %v673_v2 }
  0x36   :  { %518 = vlog2.f32 %v61_v3 }
  0x37   :  { %v383_v6 = vsel %vm279_vm6, %v381_v4, 0.0  ;;  %v384_v12 = vsel %vm279_vm6, %v382_v5, 0.0 }
  0x38   :  { %v385_v13 = vadd.f32 %v384_v12, %v383_v6 }
  0x3a   :  { %386 = vadd.xlane.f32.xlu1 %v385_v13 }
  0x3c   :  { %v513_v14 = vpop.eup %512 }
  0x3d   :  { %v515_v15 = vpop.eup %514  ;;  %v71_v16 = vmul.f32 0.6931472, %v513_v14 }
  0x3e   :  { %v517_v17 = vpop.eup %516  ;;  %v73_v18 = vmul.f32 0.6931472, %v515_v15 }
  0x3f   :  { %v75_v19 = vmul.f32 0.6931472, %v517_v17  ;;  %v89_v20 = vmul.f32 %v622_v9, %v71_v16 }
  0x40   :  { %v90_v21 = vmul.f32 %v625_v10, %v73_v18 }
  0x41   :  { %v91_v24 = vmul.f32 %v628_v11, %v75_v19  ;;  %v471_v25 = vrot.slane %v89_v20, 10 }
  0x42   :  { %v472_v28 = vrot.slane %v90_v21, 10 }
  0x43   :  { %v519_v29 = vpop.eup %518  ;;  %v132_v30 = vsub.f32 %v89_v20, %v91_v24  ;;  %v473_v31 = vrot.slane %v91_v24, 10  ;;  %v182_v32 = vsub.f32 %v89_v20, %v471_v25 }
  0x44   :  { %v69_v34 = vmul.f32 0.6931472, %v519_v29  ;;  %v183_v35 = vsub.f32 %v90_v21, %v472_v28 }
  0x45   :  { %v134_v37 = vand.u32 2147483647, %v132_v30  ;;  %v184_v39 = vsub.f32 %v91_v24, %v473_v31  ;;  %v186_v40 = vand.u32 2147483647, %v182_v32  ;;  %v258_v30 = vand.u32 4, %v650_v23 }
  0x46   :  { %v88_v42 = vmul.f32 %v619_v8, %v69_v34  ;;  %v187_v43 = vand.u32 2147483647, %v183_v35  ;;  %v250_v35 = vand.u32 1, %v650_v23 }
  0x47   :  { %v138_v45 = vmul.f32 %v136_v27, %v134_v37  ;;  %v188_v46 = vand.u32 2147483647, %v184_v39  ;;  %v206_v9 = vmul.f32 %v202_v36, %v186_v40  ;;  %v262_v36 = vand.u32 8, %v650_v23 }
  0x48   :  { %v131_v49 = vsub.f32 %v88_v42, %v90_v21  ;;  %v470_v51 = vrot.slane %v88_v42, 10  ;;  %v207_v52 = vmul.f32 %v203_v41, %v187_v43  ;;  %vm259_vm8 = vcmp.ne.s32.totalorder %v258_v30, 0 }
  0x49   :  { %v142_v55 = vcombine.high %v138_v45, %v138_v45  ;;  %v208_v58 = vmul.f32 %v204_v47, %v188_v46  ;;  %v146_v60 = vsel %vm104_vm1, %v138_v45, 0.0  ;;  %v214_v0 = vcombine.high %v206_v9, %v206_v9 }
  0x4a   :  { %v133_v53 = vand.u32 2147483647, %v131_v49  ;;  %v181_v56 = vsub.f32 %v88_v42, %v470_v51  ;;  %v215_v11 = vcombine.high %v207_v52, %v207_v52  ;;  %v223_v3 = vsel %vm221_vm7, %v206_v9, 0.0 }
  0x4b   :  { %v155_v5 = vsel %vm104_vm1, %v142_v55, 0.0  ;;  %v216_v13 = vcombine.high %v208_v58, %v208_v58  ;;  %v225_v14 = vsel %vm221_vm7, %v207_v52, 0.0  ;;  %v236_v17 = vsel %vm221_vm7, %v214_v0, 0.0 }
  0x4c   :  { %v137_v59 = vmul.f32 %v135_v50, %v133_v53  ;;  %v185_v62 = vand.u32 2147483647, %v181_v56  ;;  %v227_v21 = vsel %vm221_vm7, %v208_v58, 0.0  ;;  %v238_v24 = vsel %vm221_vm7, %v215_v11, 0.0 }
  0x4d   :  { %v240_v29 = vsel %vm221_vm7, %v216_v13, 0.0  ;;  %vm251_vm9 = vcmp.ne.s32.totalorder %v250_v35, 0  ;;  %vm263_vm10 = vcmp.ne.s32.totalorder %v262_v36, 0  ;;  %v480_v49 = vsel %vm259_vm8, 1.0, %v590_v7 }
  0x4e   :  { %v141_v4 = vcombine.high %v137_v59, %v137_v59  ;;  %v145_v10 = vsel %vm104_vm1, %v137_v59, 0.0  ;;  %v205_v6 = vmul.f32 %v201_v57, %v185_v62  ;;  %v478_v23 = vsel %vm251_vm9, 1.0, %v590_v7 }
  0x4f   :  { %v147_v12 = vadd.f32 %v146_v60, %v145_v10  ;;  %v481_v52 = vsel %vm263_vm10, 1.0, %v590_v7  ;;  %v321_v57 = vrot.slane %v480_v49, %v659_v48  ;;  %v270_v58 = vrot.slane %v478_v23, %v659_v48 }
  0x50   :  { %v154_v8 = vsel %vm104_vm1, %v141_v4, 0.0  ;;  %v213_v15 = vcombine.high %v205_v6, %v205_v6  ;;  %v222_v16 = vsel %vm221_vm7, %v205_v6, 0.0  ;;  %v346_v0 = vrot.slane %v481_v52, %v659_v48 }
  0x51   :  { %v148_v18 = vrot.slane %v147_v12, 4  ;;  %v156_v19 = vadd.f32 %v155_v5, %v154_v8  ;;  %v224_v20 = vadd.f32 %v223_v3, %v222_v16  ;;  %v325_v4 = vrot.slane %v480_v49, %v663_v54 }
  0x52   :  { %v235_v22 = vsel %vm221_vm7, %v213_v15, 0.0  ;;  %v274_v10 = vrot.slane %v478_v23, %v663_v54  ;;  %v350_v7 = vrot.slane %v481_v52, %v663_v54  ;;  %v409_v8 = vmul.f32 %v346_v0, %v671_v1 }
  0x53   :  { %v149_v25 = vadd.f32 %v148_v18, %v147_v12  ;;  %v157_v26 = vrot.slane %v156_v19, 4  ;;  %v226_v27 = vadd.f32 %v225_v14, %v224_v20  ;;  %v237_v28 = vadd.f32 %v236_v17, %v235_v22 }
  0x54   :  { %v367_v15 = vmul.f32 %v270_v58, %v671_v1  ;;  %v410_v54 = vmul.f32 %v350_v7, %v673_v2  ;;  %v396_v36 = vmul.f32 %v325_v4, %v673_v2  ;;  %vm443_vm1 = vcmp.eq.s32.totalorder %v656_v38, 6 }
  0x55   :  { %v150_v31 = vrot.slane %v149_v25, 2  ;;  %v158_v32 = vadd.f32 %v157_v26, %v156_v19  ;;  %v228_v33 = vadd.f32 %v227_v21, %v226_v27  ;;  %v239_v34 = vadd.f32 %v238_v24, %v237_v28 }
  0x56   :  { %v368_v21 = vmul.f32 %v274_v10, %v673_v2 }
  0x57   :  { %v151_v37 = vadd.f32 %v150_v31, %v149_v25  ;;  %v159_v39 = vrot.slane %v158_v32, 2  ;;  %v229_v40 = vrot.slane %v228_v33, 4  ;;  %v241_v41 = vadd.f32 %v240_v29, %v239_v34 }
  0x58   :  { %v411_v31 = vsel %vm279_vm6, %v409_v8, 0.0  ;;  %v369_v34 = vsel %vm279_vm6, %v367_v15, 0.0  ;;  %v370_v35 = vsel %vm279_vm6, %v368_v21, 0.0 }
  0x59   :  { %v160_v42 = vadd.f32 %v159_v39, %v158_v32  ;;  %v230_v43 = vadd.f32 %v229_v40, %v228_v33  ;;  %v242_v44 = vrot.slane %v241_v41, 4  ;;  %v152_v45 = vrot.slane %v151_v37, 1 }
  0x5a   :  { %v395_v32 = vmul.f32 %v321_v57, %v671_v1  ;;  %v412_v33 = vsel %vm279_vm6, %v410_v54, 0.0  ;;  %v371_v39 = vadd.f32 %v370_v35, %v369_v34 }
  0x5b   :  { %v231_v46 = vrot.slane %v230_v43, 2  ;;  %v243_v47 = vadd.f32 %v242_v44, %v241_v41  ;;  %v161_v50 = vrot.slane %v160_v42, 1  ;;  %v153_v53 = vadd.f32 %v152_v45, %v151_v37 }
  0x5c   :  { %v413_v37 = vadd.f32 %v412_v33, %v411_v31  ;;  %v397_v40 = vsel %vm279_vm6, %v395_v32, 0.0  ;;  %v398_v41 = vsel %vm279_vm6, %v396_v36, 0.0 }
  0x5d   :  { %v232_v51 = vadd.f32 %v231_v46, %v230_v43  ;;  %v244_v9 = vrot.slane %v243_v47, 2  ;;  %v162_v59 = vadd.f32 %v161_v50, %v160_v42  ;;  %v399_v42 = vadd.f32 %v398_v41, %v397_v40 }
  0x5f   :  { %v233_v55 = vrot.slane %v232_v51, 1  ;;  %v245_v56 = vadd.f32 %v244_v9, %v243_v47 }
  0x61   :  { %v234_v60 = vadd.f32 %v233_v55, %v232_v51  ;;  %v246_v62 = vrot.slane %v245_v56, 1 }
  0x63   :  { %v247_v11 = vadd.f32 %v246_v62, %v245_v56  ;;  %v248_v3 = vadd.f32 %v234_v60, %v153_v53 }
  0x65   :  { %v249_v5 = vadd.f32 %v247_v11, %v162_v59  ;;  %v328_v6 = vmul.f32 %v321_v57, %v248_v3  ;;  %v277_v12 = vmul.f32 %v270_v58, %v248_v3  ;;  %v353_v13 = vmul.f32 %v346_v0, %v248_v3 }
  0x66   :  { %v303_v14 = vmul.f32 %v666_v61, %v248_v3 }
  0x67   :  { %v329_v16 = vmul.f32 %v325_v4, %v249_v5  ;;  %v330_v48 = vsel %vm279_vm6, %v328_v6, 0.0  ;;  %v278_v17 = vmul.f32 %v274_v10, %v249_v5  ;;  %v280_v18 = vsel %vm279_vm6, %v277_v12, 0.0 }
  0x68   :  { %v354_v19 = vmul.f32 %v350_v7, %v249_v5  ;;  %v304_v20 = vmul.f32 %v669_v63, %v249_v5  ;;  %v355_v24 = vsel %vm279_vm6, %v353_v13, 0.0  ;;  %v305_v25 = vsel %vm279_vm6, %v303_v14, 0.0 }
  0x69   :  { %v331_v22 = vsel %vm279_vm6, %v329_v16, 0.0  ;;  %v281_v61 = vsel %vm279_vm6, %v278_v17, 0.0 }
  0x6a   :  { %v332_v26 = vadd.f32 %v331_v22, %v330_v48  ;;  %v282_v27 = vadd.f32 %v281_v61, %v280_v18  ;;  %v356_v28 = vsel %vm279_vm6, %v354_v19, 0.0  ;;  %v306_v29 = vsel %vm279_vm6, %v304_v20, 0.0 }
  0x6b   :  { %v357_v63 = vadd.f32 %v356_v28, %v355_v24  ;;  %v307_v30 = vadd.f32 %v306_v29, %v305_v25 }
  0x6c   :  { %333 = vadd.xlane.f32.xlu1 %v332_v26  ;;  %283 = vadd.xlane.f32.xlu0 %v282_v27 }
  0x70   :  { %358 = vadd.xlane.f32.xlu1 %v357_v63  ;;  %308 = vadd.xlane.f32.xlu0 %v307_v30 }
  0x74   :  { %414 = vadd.xlane.f32.xlu1 %v413_v37  ;;  %372 = vadd.xlane.f32.xlu0 %v371_v39 }
  0x78   :  { %400 = vadd.xlane.f32.xlu0 %v399_v42 }
  0xc3   :  { %v387_v1 = vpop.xlane.xlu1 %386 }
  0xc4   :  { %v388_v43 = vrot.slane %v387_v1, 4 }
  0xc6   :  { %v389_v50 = vadd.f32 %v388_v43, %v387_v1 }
  0xc8   :  { %v390_v59 = vrot.slane %v389_v50, 2 }
  0xca   :  { %v391_v16 = vadd.f32 %v390_v59, %v389_v50 }
  0xcc   :  { %v392_v26 = vrot.slane %v391_v16, 1 }
  0xce   :  { %v393_v30 = vadd.f32 %v392_v26, %v391_v16 }
  0xf5   :  { %v334_v44 = vpop.xlane.xlu1 %333  ;;  %v284_v45 = vpop.xlane.xlu0 %283 }
  0xf6   :  { %v335_v46 = vrot.slane %v334_v44, 4  ;;  %v285_v47 = vrot.slane %v284_v45, 4 }
  0xf8   :  { %v336_v49 = vadd.f32 %v335_v46, %v334_v44  ;;  %v286_v2 = vadd.f32 %v285_v47, %v284_v45 }
  0xf9   :  { %v359_v51 = vpop.xlane.xlu1 %358  ;;  %v309_v9 = vpop.xlane.xlu0 %308 }
  0xfa   :  { %v337_v23 = vrot.slane %v336_v49, 2  ;;  %v287_v52 = vrot.slane %v286_v2, 2  ;;  %v360_v53 = vrot.slane %v359_v51, 4  ;;  %v310_v55 = vrot.slane %v309_v9, 4 }
  0xfc   :  { %v361_v56 = vadd.f32 %v360_v53, %v359_v51  ;;  %v311_v57 = vadd.f32 %v310_v55, %v309_v9  ;;  %v288_v58 = vadd.f32 %v287_v52, %v286_v2  ;;  %v338_v0 = vadd.f32 %v337_v23, %v336_v49 }
  0xfd   :  { %v415_v60 = vpop.xlane.xlu1 %414  ;;  %v373_v62 = vpop.xlane.xlu0 %372 }
  0xfe   :  { %v362_v11 = vrot.slane %v361_v56, 2  ;;  %v312_v3 = vrot.slane %v311_v57, 2  ;;  %v416_v4 = vrot.slane %v415_v60, 4  ;;  %v374_v10 = vrot.slane %v373_v62, 4 }
  0xff   :  { %v289_v7 = vrot.slane %v288_v58, 1  ;;  %v339_v15 = vrot.slane %v338_v0, 1 }
 0x100   :  { %v417_v5 = vadd.f32 %v416_v4, %v415_v60  ;;  %v375_v6 = vadd.f32 %v374_v10, %v373_v62  ;;  %v313_v12 = vadd.f32 %v312_v3, %v311_v57  ;;  %v363_v13 = vadd.f32 %v362_v11, %v361_v56 }
 0x101   :  { %v401_v14 = vpop.xlane.xlu0 %400  ;;  %v290_v8 = vadd.f32 %v289_v7, %v288_v58  ;;  %v340_v24 = vadd.f32 %v339_v15, %v338_v0 }
 0x102   :  { %v418_v48 = vrot.slane %v417_v5, 2  ;;  %v376_v17 = vrot.slane %v375_v6, 2  ;;  %v402_v18 = vrot.slane %v401_v14, 4  ;;  %v314_v19 = vrot.slane %v313_v12, 1 }
 0x103   :  { %482 = vpush %v290_v8  ;;  %v364_v20 = vrot.slane %v363_v13, 1 }
 0x104   :  { %v403_v54 = vadd.f32 %v402_v18, %v401_v14  ;;  %v315_v21 = vadd.f32 %v314_v19, %v313_v12  ;;  %v377_v22 = vadd.f32 %v376_v17, %v375_v6  ;;  %v419_v61 = vadd.f32 %v418_v48, %v417_v5 }
 0x105   :  { %v365_v25 = vadd.f32 %v364_v20, %v363_v13 }
 0x106   :  { %v404_v27 = vrot.slane %v403_v54, 2  ;;  %484 = vpush %v315_v21  ;;  %v378_v28 = vrot.slane %v377_v22, 1  ;;  %v420_v31 = vrot.slane %v419_v61, 1 }
 0x107   :  { %486 = vpush %v340_v24 }
 0x108   :  { %v405_v29 = vadd.f32 %v404_v27, %v403_v54  ;;  %488 = vpush %v365_v25  ;;  %v379_v63 = vadd.f32 %v378_v28, %v377_v22  ;;  %v421_v34 = vadd.f32 %v420_v31, %v419_v61 }
 0x10a   :  { %490 = vpush %v379_v63  ;;  %v406_v32 = vrot.slane %v405_v29, 1 }
 0x10b   :  { %492 = vpush %v393_v30 }
 0x10c   :  { %v407_v33 = vadd.f32 %v406_v32, %v405_v29 }
 0x10e   :  { %494 = vpush %v407_v33 }
 0x10f   :  { %496 = vpush %v421_v34 }
 0x134   :  { %s483_s2 = spop %482 }
 0x135   :  { %v426_v35 = vstv %s483_s2 }
 0x136   :  { %v427_v36 = vsel %vm425_vm11, %v426_v35, 0.0 }
 0x137   :  { %s485_s24 = spop %484 }
 0x138   :  { %v429_v37 = vstv %s485_s24  ;;  %s487_s25 = spop %486 }
 0x139   :  { %v430_v39 = vsel %vm428_vm12, %v429_v37, %v427_v36  ;;  %v432_v40 = vstv %s487_s25  ;;  %s489_s26 = spop %488 }
 0x13a   :  { %v433_v41 = vsel %vm431_vm13, %v432_v40, %v430_v39  ;;  %v435_v42 = vstv %s489_s26 }
 0x13b   :  { %v436_v1 = vsel %vm434_vm14, %v435_v42, %v433_v41  ;;  %s491_s27 = spop %490 }
 0x13c   :  { %v438_v43 = vstv %s491_s27  ;;  %s493_s28 = spop %492 }
 0x13d   :  { %v439_v44 = vsel %vm437_vm15, %v438_v43, %v436_v1  ;;  %v441_v45 = vstv %s493_s28 }
 0x13e   :  { %v442_v46 = vsel %vm440_vm0, %v441_v45, %v439_v44 }
 0x13f   :  { %s495_s4 = spop %494 }
 0x140   :  { %v444_v47 = vstv %s495_s4  ;;  %s497_s5 = spop %496 }
 0x141   :  { %v445_v49 = vsel %vm443_vm1, %v444_v47, %v442_v46  ;;  %v447_v2 = vstv %s497_s5 }
 0x142   :  { %v448_v50 = vsel %vm446_vm2, %v447_v2, %v445_v49 }
 0x143   :  { %449 = vst [vmem:[#allocation7] sm:$0xff] %v448_v50 }
 0x144   :  { %571 = shalt.err (!%p568_p0)
}
 0x145   :  { %459 = dma.vmem_to_hbm [thread:$0]  %s457_s30, 128, %s757_s3, [#allocation4]  }
 0x146   :  { %584 = dma.done.wait [#allocation4], 128  }
 0x147   :  { %585 = vsyncadd [#allocation4], 4294967168 }
 0x148   :  { %463 = vsyncpa [#allocation3], 1 }
 0x149   :  { %464 = vsyncpa [#allocation6], 1 }
 0x14a   :  { %465 = vsyncpa [#allocation4], 1 }

</bundles_post_ra>
